<compile_context>
chip_gen: v5e
topology: v5e:2x2
jax: 0.10.0
libtpu: 0.0.40
codegen_flags: <defaults>
</compile_context>

<pallas_src>
import functools

import jax
import jax.numpy as jnp
from jax.experimental import pallas as pl
from jax.experimental.pallas import tpu as pltpu


_LANE = 128
_SUBLANE = 8
_NEG_INF = -1e30


def _loss_kernel(x_ref, w_ref, b_ref, lab_ref, logits_ref, psum_ref, *, n_valid):
    # x_ref:      (TM, D)      f32  decoder features for this row tile
    # w_ref:      (D, C_pad)   f32  classifier weight (VMEM-resident)
    # b_ref:      (1, C_pad)   f32  classifier bias (padded classes = -1e30)
    # lab_ref:    (TM, 1)      i32  target class ids
    # logits_ref: (TM, C_pad)  f32  output logits (lane-dense)
    # psum_ref:   (1, 8, 128)  f32  per-tile partial sum of NLL (broadcast)
    x = x_ref[...]
    w = w_ref[...]
    b = b_ref[...]

    # --- model hot path: MXU matmul + bias ---
    logits = jnp.dot(x, w, preferred_element_type=jnp.float32) + b  # (TM, C_pad)
    logits_ref[...] = logits

    tm, c_pad = logits.shape

    # --- cross-entropy in the shifted domain (row max cancels out) ---
    m = jnp.max(logits, axis=-1, keepdims=True)                       # (TM, 1)
    shifted = logits - m                                               # (TM, C_pad)
    lse_shifted = jnp.log(jnp.sum(jnp.exp(shifted), axis=-1, keepdims=True))

    labels = lab_ref[...]                                              # (TM, 1)
    class_ids = jax.lax.broadcasted_iota(jnp.int32, (tm, c_pad), 1)
    onehot = class_ids == labels
    picked_shifted = jnp.sum(jnp.where(onehot, shifted, 0.0), axis=-1,
                             keepdims=True)                            # (TM, 1)

    per_example = lse_shifted - picked_shifted                         # (TM, 1)

    # Mask rows beyond the real N (row padding to a multiple of the tile).
    row_ids = (pl.program_id(0) * tm
               + jax.lax.broadcasted_iota(jnp.int32, (tm, 1), 0))
    per_example = jnp.where(row_ids < n_valid, per_example, 0.0)

    partial = jnp.sum(per_example)
    psum_ref[...] = jnp.full(psum_ref.shape, partial, dtype=jnp.float32)


def loss_forward(en, de_1, tgt_mask, tgt_key_padding_mask, label1, w, b, *, tm=None):
    """Mirrors Loss.forward: returns (type_loss, pre_type)."""
    del en, tgt_mask, tgt_key_padding_mask  # unused by the synthetic model

    bsz, seq, d = de_1.shape
    c = w.shape[-1]
    n = bsz * seq

    # Lane-dense class dimension.
    c_pad = max(_LANE, ((c + _LANE - 1) // _LANE) * _LANE)

    # Row-tile size: largest tile under a conservative VMEM budget (sized
    # against v7x's 64 MiB physical / 32 MiB default scoped VMEM).
    if tm is None:
        budget = 24 << 20
        bytes_per_row = 2 * (d + c_pad + _LANE) * 4  # x + logits + labels, dbl-buffered
        tm_cap = max(_SUBLANE, (budget // bytes_per_row) // _SUBLANE * _SUBLANE)
        tm = min(1024, tm_cap)
    # Tile must be sublane-aligned for the (8, 128) layout constraint.
    tm = max(_SUBLANE, (tm + _SUBLANE - 1) // _SUBLANE * _SUBLANE)
    if n <= tm:
        tm = max(_SUBLANE, ((n + _SUBLANE - 1) // _SUBLANE) * _SUBLANE)
    n_pad = ((n + tm - 1) // tm) * tm
    num_tiles = n_pad // tm

    x_flat = de_1.reshape(n, d).astype(jnp.float32)
    lab_flat = label1.reshape(n, 1).astype(jnp.int32)
    if n_pad != n:
        x_flat = jnp.pad(x_flat, ((0, n_pad - n), (0, 0)))
        lab_flat = jnp.pad(lab_flat, ((0, n_pad - n), (0, 0)))

    # Pad classifier to C_pad; padded classes get -1e30 bias so exp() -> 0.
    w_p = jnp.zeros((d, c_pad), jnp.float32).at[:, :c].set(w.astype(jnp.float32))
    b_p = jnp.full((1, c_pad), _NEG_INF, jnp.float32).at[:, :c].set(
        b.reshape(1, c).astype(jnp.float32))

    # VMEM budget: resident W/b + double-buffered pipelined tiles + headroom.
    resident = (d * c_pad + _SUBLANE * c_pad) * 4
    pipelined = 2 * tm * (d + c_pad + _LANE) * 4 + 2 * _SUBLANE * _LANE * 4
    vmem_limit = int(min(max(resident + 2 * pipelined + (4 << 20), 16 << 20),
                         48 << 20))

    kernel = functools.partial(_loss_kernel, n_valid=n)

    logits_pad, psums = pl.pallas_call(
        kernel,
        out_shape=(
            jax.ShapeDtypeStruct((n_pad, c_pad), jnp.float32),
            jax.ShapeDtypeStruct((num_tiles, _SUBLANE, _LANE), jnp.float32),
        ),
        grid=(num_tiles,),
        in_specs=[
            pl.BlockSpec((tm, d), lambda i: (i, 0)),       # x tile (pipelined)
            pl.BlockSpec((d, c_pad), lambda i: (0, 0)),    # W (VMEM-resident)
            pl.BlockSpec((1, c_pad), lambda i: (0, 0)),    # b (VMEM-resident)
            pl.BlockSpec((tm, 1), lambda i: (i, 0)),       # labels tile
        ],
        out_specs=(
            pl.BlockSpec((tm, c_pad), lambda i: (i, 0)),              # lane-dense logits
            pl.BlockSpec((1, _SUBLANE, _LANE), lambda i: (i, 0, 0)),  # per-tile sums
        ),
        compiler_params=pltpu.CompilerParams(
            dimension_semantics=("parallel",),
            vmem_limit_bytes=vmem_limit,
        ),
        cost_estimate=pl.CostEstimate(
            flops=2 * n_pad * d * c_pad,
            transcendentals=n_pad * c_pad,
            bytes_accessed=4 * (n_pad * d + d * c_pad + n_pad * c_pad + n_pad),
        ),
    )(x_flat, w_p, b_p, lab_flat)

    type_loss = jnp.sum(psums[:, 0, 0]) / jnp.float32(n)
    pre_type = logits_pad[:n, :c].reshape(bsz, seq, c)  # pre_type.detach() equivalent
    return type_loss, pre_type


def _reference(de_1, label1, w, b):
    """Pure-JAX reference for the same semantics (sanity check)."""
    bsz, seq, d = de_1.shape
    c = w.shape[-1]
    logits = de_1.reshape(-1, d).astype(jnp.float32) @ w + b
    logp = jax.nn.log_softmax(logits, axis=-1)
    nll = -jnp.take_along_axis(logp, label1.reshape(-1, 1), axis=-1)
    return jnp.mean(nll), logits.reshape(bsz, seq, c)


if __name__ == "__main__":
    # Small shapes consistent with a transformer classification head.
    # S=13 -> N=26 tokens so the last tile exercises row-padding masking;
    # TM=8 forces a multi-tile grid (4 tiles) to exercise the pipelined path.
    B, S, D, C = 2, 13, 32, 16
    TM = 8

    key = jax.random.PRNGKey(0)
    k_en, k_de, k_w, k_b, k_lab = jax.random.split(key, 5)

    en = jax.random.normal(k_en, (B, S, D), dtype=jnp.float32)
    de_1 = jax.random.normal(k_de, (B, S, D), dtype=jnp.float32)
    tgt_mask = jnp.zeros((S, S), dtype=jnp.float32)
    tgt_key_padding_mask = jnp.zeros((B, S), dtype=jnp.bool_)
    label1 = jax.random.randint(k_lab, (B, S), 0, C, dtype=jnp.int32)

    # Deterministic synthetic parameters of the classification head.
    w = jax.random.normal(k_w, (D, C), dtype=jnp.float32) * 0.1
    b = jax.random.normal(k_b, (C,), dtype=jnp.float32) * 0.1

    type_loss, pre_type = loss_forward(
        en, de_1, tgt_mask, tgt_key_padding_mask, label1, w, b, tm=TM
    )
    jax.block_until_ready((type_loss, pre_type))

    ref_loss, ref_logits = _reference(de_1, label1, w, b)
    assert pre_type.shape == (B, S, C)
    assert jnp.allclose(type_loss, ref_loss, atol=1e-4, rtol=1e-4), (type_loss, ref_loss)
    assert jnp.allclose(pre_type, ref_logits, atol=1e-4, rtol=1e-4)

    print("KERNEL_OK")
</pallas_src>

<mosaic_0001>
module attributes {stable_mosaic.version = 11 : i64} {
  func.func @_loss_kernel(%arg0: i32, %arg1: memref<8x32xf32, #tpu.memory_space<vmem>>, %arg2: memref<32x128xf32, #tpu.memory_space<vmem>>, %arg3: memref<1x128xf32, #tpu.memory_space<vmem>>, %arg4: memref<8x1xi32, #tpu.memory_space<vmem>>, %arg5: memref<8x128xf32, #tpu.memory_space<vmem>>, %arg6: memref<1x8x128xf32, #tpu.memory_space<vmem>>) attributes {dimension_semantics = [#tpu.dimension_semantics<parallel>], iteration_bounds = array<i64: 4>, scalar_prefetch = 0 : i64, scratch_operands = 0 : i64, tpu.core_type = #tpu.core_type<tc>, window_params = [{transform_indices = @transform_0, window_bounds = array<i64: 8, 32>}, {pipeline_mode = #tpu.pipeline_mode<synchronous>, transform_indices = @transform_1, window_bounds = array<i64: 32, 128>}, {pipeline_mode = #tpu.pipeline_mode<synchronous>, transform_indices = @transform_2, window_bounds = array<i64: 1, 128>}, {transform_indices = @transform_3, window_bounds = array<i64: 8, 1>}, {transform_indices = @transform_4, window_bounds = array<i64: 8, 128>}, {transform_indices = @transform_5, window_bounds = array<i64: 1, 8, 128>}]} {
    %c0 = arith.constant 0 : index
    %c0_0 = arith.constant 0 : index
    %0 = vector.load %arg1[%c0, %c0_0] : memref<8x32xf32, #tpu.memory_space<vmem>>, vector<8x32xf32>
    %c0_1 = arith.constant 0 : index
    %c0_2 = arith.constant 0 : index
    %1 = vector.load %arg2[%c0_1, %c0_2] : memref<32x128xf32, #tpu.memory_space<vmem>>, vector<32x128xf32>
    %c0_3 = arith.constant 0 : index
    %c0_4 = arith.constant 0 : index
    %2 = vector.load %arg3[%c0_3, %c0_4] : memref<1x128xf32, #tpu.memory_space<vmem>>, vector<1x128xf32>
    %cst = arith.constant dense<0.000000e+00> : vector<8x128xf32>
    %3 = tpu.matmul %0, %1, %cst {dimension_numbers = #tpu.dot_dimension_numbers<[1], [0], [0], [1], [0, 0, 1, 1], [], []>} : vector<8x32xf32>, vector<32x128xf32>, vector<8x128xf32> -> vector<8x128xf32>
    %4 = vector.broadcast %2 : vector<1x128xf32> to vector<8x128xf32>
    %5 = arith.addf %3, %4 : vector<8x128xf32>
    %c0_5 = arith.constant 0 : index
    %c0_6 = arith.constant 0 : index
    %6 = vector.load %arg5[%c0_5, %c0_6] : memref<8x128xf32, #tpu.memory_space<vmem>>, vector<8x128xf32>
    tpu.vector_store %arg5[%c0_5, %c0_6], %5 {strides = array<i32>} : memref<8x128xf32, #tpu.memory_space<vmem>>, vector<8x128xf32>,
    %cst_7 = arith.constant dense<0xFF800000> : vector<8xf32>
    %7 = vector.multi_reduction <maximumf>, %5, %cst_7 [1] : vector<8x128xf32> to vector<8xf32>
    %8 = vector.shape_cast %7 : vector<8xf32> to vector<8x1xf32>
    %9 = vector.broadcast %8 : vector<8x1xf32> to vector<8x128xf32>
    %10 = arith.subf %5, %9 : vector<8x128xf32>
    %11 = math.exp %10 : vector<8x128xf32>
    %cst_8 = arith.constant dense<0.000000e+00> : vector<8xf32>
    %12 = vector.multi_reduction <add>, %11, %cst_8 [1] : vector<8x128xf32> to vector<8xf32>
    %13 = vector.shape_cast %12 : vector<8xf32> to vector<8x1xf32>
    %14 = math.log %13 : vector<8x1xf32>
    %c0_9 = arith.constant 0 : index
    %c0_10 = arith.constant 0 : index
    %15 = vector.load %arg4[%c0_9, %c0_10] : memref<8x1xi32, #tpu.memory_space<vmem>>, vector<8x1xi32>
    %16 = tpu.iota {dimensions = array<i32: 1>} : vector<8x128xi32>
    %17 = vector.broadcast %15 : vector<8x1xi32> to vector<8x128xi32>
    %18 = arith.cmpi eq, %16, %17 : vector<8x128xi32>
    %cst_11 = arith.constant 0.000000e+00 : f32
    %19 = vector.broadcast %cst_11 : f32 to vector<8x128xf32>
    %20 = arith.select %18, %10, %19 : vector<8x128xi1>, vector<8x128xf32>
    %cst_12 = arith.constant dense<0.000000e+00> : vector<8xf32>
    %21 = vector.multi_reduction <add>, %20, %cst_12 [1] : vector<8x128xf32> to vector<8xf32>
    %22 = vector.shape_cast %21 : vector<8xf32> to vector<8x1xf32>
    %23 = arith.subf %14, %22 : vector<8x1xf32>
    %c8_i32 = arith.constant 8 : i32
    %24 = arith.muli %arg0, %c8_i32 : i32
    %25 = tpu.iota {dimensions = array<i32: 0>} : vector<8x1xi32>
    %26 = vector.broadcast %24 : i32 to vector<8x1xi32>
    %27 = arith.addi %26, %25 : vector<8x1xi32>
    %c26_i32 = arith.constant 26 : i32
    %28 = vector.broadcast %c26_i32 : i32 to vector<8x1xi32>
    %29 = arith.cmpi slt, %27, %28 : vector<8x1xi32>
    %cst_13 = arith.constant 0.000000e+00 : f32
    %30 = vector.broadcast %cst_13 : f32 to vector<8x1xf32>
    %31 = arith.select %29, %23, %30 : vector<8x1xi1>, vector<8x1xf32>
    %32 = vector.shape_cast %31 : vector<8x1xf32> to vector<1x8x1xf32>
    %cst_14 = arith.constant dense<0.000000e+00> : vector<1xf32>
    %33 = vector.multi_reduction <add>, %32, %cst_14 [1, 2] : vector<1x8x1xf32> to vector<1xf32>
    %34 = vector.shape_cast %33 : vector<1xf32> to vector<1x1x1xf32>
    %35 = vector.extract %34[0, 0, 0] : f32 from vector<1x1x1xf32>
    %36 = vector.broadcast %35 : f32 to vector<1x8x128xf32>
    %c0_15 = arith.constant 0 : index
    %c0_16 = arith.constant 0 : index
    %c0_17 = arith.constant 0 : index
    %37 = vector.load %arg6[%c0_15, %c0_16, %c0_17] : memref<1x8x128xf32, #tpu.memory_space<vmem>>, vector<1x8x128xf32>
    tpu.vector_store %arg6[%c0_15, %c0_16, %c0_17], %36 {strides = array<i32>} : memref<1x8x128xf32, #tpu.memory_space<vmem>>, vector<1x8x128xf32>,
    return
  }
  func.func @transform_0(%arg0: i32) -> (i32, i32) {
    %c0_i32 = arith.constant 0 : i32
    %c0_i32_0 = arith.constant 0 : i32
    return %arg0, %c0_i32 : i32, i32
  }
  func.func @transform_1(%arg0: i32) -> (i32, i32) {
    %c0_i32 = arith.constant 0 : i32
    %c0_i32_0 = arith.constant 0 : i32
    %c0_i32_1 = arith.constant 0 : i32
    return %c0_i32, %c0_i32_0 : i32, i32
  }
  func.func @transform_2(%arg0: i32) -> (i32, i32) {
    %c0_i32 = arith.constant 0 : i32
    %c0_i32_0 = arith.constant 0 : i32
    %c0_i32_1 = arith.constant 0 : i32
    return %c0_i32, %c0_i32_0 : i32, i32
  }
  func.func @transform_3(%arg0: i32) -> (i32, i32) {
    %c0_i32 = arith.constant 0 : i32
    %c0_i32_0 = arith.constant 0 : i32
    return %arg0, %c0_i32 : i32, i32
  }
  func.func @transform_4(%arg0: i32) -> (i32, i32) {
    %c0_i32 = arith.constant 0 : i32
    %c0_i32_0 = arith.constant 0 : i32
    return %arg0, %c0_i32 : i32, i32
  }
  func.func @transform_5(%arg0: i32) -> (i32, i32, i32) {
    %c0_i32 = arith.constant 0 : i32
    %c0_i32_0 = arith.constant 0 : i32
    %c0_i32_1 = arith.constant 0 : i32
    return %arg0, %c0_i32, %c0_i32_0 : i32, i32, i32
  }
}

</mosaic_0001>

<bundles_post_ra>
// kernel: tpu_custom_call.1
= control target key start
LH: loop header
LB: loop body
LE: loop exit
PB: predicated region body
PF: predicated region fallthrough
CT: control target
= control target key end

     0   :  { %11 = vsyncpa [#allocation3], 0  ;;  %s870_s0 = inlined_call_operand.vmem [shape: f32[32,32], index: 0, kind: input, shape index: {}]   ;;  %s871_s1 = inlined_call_operand.hbm [shape: f32[32,128], index: 1, kind: input, shape index: {}]   ;;  %s872_s2 = inlined_call_operand.vmem [shape: f32[1,128], index: 2, kind: input, shape index: {}]   ;;  %s873_s3 = inlined_call_operand.vmem [shape: s32[32,1], index: 3, kind: input, shape index: {}]   ;;  %s874_s4 = inlined_call_operand.hbm [shape: f32[32,128], index: 4, kind: output, shape index: {0}]   ;;  %s875_s5 = inlined_call_operand.hbm [shape: f32[4,8,128], index: 5, kind: output, shape index: {1}]  }
   0x1   :  { %12 = vsyncpa [#allocation4], 0 }
   0x2   :  { %14 = vsyncpa [#allocation4 + $0x1], 0 }
   0x3   :  { %15 = vsyncpa [#allocation7], 0 }
   0x4   :  { %17 = vsyncpa [#allocation7 + $0x1], 0  ;;  %s738_s18 = smov 0   ;;  %s740_s19 = smov 0  }
   0x5   :  { %s742_s20 = smov 0   ;;  %s744_s21 = smov 0  }
   0x6 LB: > { %s759_s22 = sadd.s32 4294967295, %s702_s21   ;;  %s490_s23 = sadd.s32 4294967294, %s702_s21   ;;  %s702_s21 = sphi %s744_s21, %s881_s21   ;;  %s698_s20 = sphi %s742_s20, %s880_s20   ;;  %s694_s19 = sphi %s740_s19, %s879_s19   ;;  %s690_s18 = sphi %s738_s18, %s878_s18  }
   0x7   : > { %s763_s24 = sadd.s32 1, %s702_s21   ;;  %s124_s25 = sadd.s32 1, %s698_s20 }
   0x8   : > { %s121_s26 = ssub.s32 %s702_s21, %s763_s24  ;;  %p134_p0 = scmp.ne.s32.totalorder %s698_s20, %s694_s19 }
   0x9   : > { %p122_p1 = scmp.eq.s32.totalorder %s121_s26, 0  ;;  %p135_p2 = scmp.eq.s32.totalorder %s759_s22, 3 }
   0xa   : > { %p140_p3 = scmp.ne.s32.totalorder %s694_s19, %s690_s18  ;;  %p141_p4 = scmp.eq.s32.totalorder %s490_s23, 3 }
   0xb   : > { %s774_s27 = scalar_select %p122_p1, %s698_s20, %s124_s25  }
   0xc   : > { %p776_p5 = por %p135_p2, %p134_p0  ;;  %p780_p6 = por %p141_p4, %p140_p3 }
   0xd   : > { %p491_p7 = scmp.ge.s32.totalorder %s702_s21, 1  ;;  %p174_p8 = scmp.lt.s32.totalorder %s702_s21, 5 }
   0xe   : > { %p529_p9 = scmp.eq.s32.totalorder %s759_s22, 0  ;;  %s185_s7 = sshll.u32 %s871_s1, 4  ;;  %s186_s7 = int_to_ptr.hbm [resolvable:$true] %s185_s7 }
   0xf   : > { %p175_p10 = pnand %p491_p7, %p174_p8  ;;  %s704_s8 = smov [#allocation2]  }
  0x10   : > { %s187_s9 = sshll.u32 %s704_s8, 4  ;;  %s705_s10 = smov 128   ;;  %s188_s9 = int_to_ptr.vmem [resolvable:$true] %s187_s9 }
  0x11   : > { %p518_p11 = pneg %p175_p10  ;;  %s706_s11 = smov 8  }
  0x12   : > { %220 = sbr.rel (%p175_p10) target bundleno = 599 (0x257), region = 36 }
  0x13   : > { %p519_p12 = pnand %p529_p9, %p518_p11 }
  0x15   : > { %521 = dma.hbm_to_vmem [thread:$0]  (!%p519_p12), %s186_s7, 512, %s188_s9, [#allocation3], %s705_s10, %s705_s10, %s706_s11  }
  0x17   : > { %677 = dma.done.wait (%p529_p9), [#allocation3], 512  }
  0x18   : > { %679 = vsyncadd (%p529_p9), [#allocation3], 4294966784  ;;  %p257_p13 = scmp.lt.s32.totalorder %s759_s22, 3  ;;  %v269_v0 = vld [vmem:[#allocation2 + $0x18] sm:$0xff]  ;;  %v268_v1 = vld [vmem:[#allocation2 + $0x10] sm:$0xff]  ;;  %vm274_vm0 = vcmask 261120   ;;  %v309_v14 = vlaneseq }
  0x19   : > { %290 = vmatpush.msra.mxu0 %v269_v0  ;;  %v267_v2 = vld [vmem:[#allocation2 + $0x8] sm:$0xff]  ;;  %v266_v3 = vld [vmem:[#allocation2] sm:$0xff]  ;;  %v707_v5 = vmov 0   ;;  %s802_s17 = sand.u32 1, %s694_s19   ;;  %s817_s9 = sshll.u32 %s759_s22, 3  ;;  %vm326_vm3 = vcmask 7168  }
  0x1a   : > { %s258_s12 = scalar_select %p257_p13, %s759_s22, 3  ;;  %568 = vset.pattern.permute.xlu0 %v707_v5  ;;  %v569_v6 = vld [vmem:[%s872_s2] ss:$0 sm:$0xff]  ;;  %v310_v15 = vand.u32 127, %v309_v14  ;;  %v321_v19 = vshrl.u32 %v309_v14, 7  ;;  %v322_v20 = vstv %s817_s9 }
  0x1b   : > { %291 = vmatpush.msra.mxu0 %v268_v1  ;;  %s496_s23 = sshll.u32 %s802_s17, 3  ;;  %s355_s11 = scalar_lea.hbm %s874_s4, %s817_s9 }
  0x1c   : > { %s498_s13 = sshll.u32 %s258_s12, 3  ;;  %s810_s30 = scalar_lea.vmem [#allocation5], %s496_s23  ;;  %v323_v21 = vadd.s32 %v322_v20, %v321_v19 }
  0x1d   : > { %s260_s16 = scalar_lea.vmem %s870_s0, %s498_s13  ;;  %292 = vmatpush.msra.mxu0 %v267_v2  ;;  %s264_s8 = scalar_lea.vmem %s873_s3, %s498_s13 }
  0x1e   : > { %v265_v4 = vld [vmem:[%s260_s16] sm:$0xff]  ;;  %vm324_vm2 = vcmp.lt.s32.totalorder %v323_v21, 26  ;;  %s357_s12 = sshll.u32 %s810_s30, 4  ;;  %s359_s13 = sshll.u32 %s355_s11, 4  ;;  %s358_s12 = int_to_ptr.vmem [resolvable:$true] %s357_s12  ;;  %s360_s13 = int_to_ptr.hbm [resolvable:$true] %s359_s13 }
  0x1f   : > { %293 = vmatpush.msra.mxu0 %v266_v3  ;;  %v308_v9 = vld [vmem:[%s264_s8] sm:$0xff]  ;;  %s340_s14 = scalar_lea.sflag [#allocation4], %s802_s17  ;;  %s618_s15 = sshra.s32 %s360_s13, 4  ;;  %s619_s15 = int_to_ptr.hbm [resolvable:$true] %s618_s15 }
  0x20   : > { %500 = vmatmul.msk.f32.vlgmr.msra.gmra.mxu0 %vm274_vm0, %v265_v4  ;;  %s620_s16 = scalar_lea.hbm %s619_s15, 8  ;;  %s624_s6 = scalar_lea.hbm %s874_s4, 32 }
  0x21   : > { %p621_p0 = scmp.ne.s32.totalorder %s619_s15, %s620_s16  ;;  %p625_p3 = scmp.lt.s32.totalorder %s619_s15, %s874_s4 }
  0x22   : > { %p626_p4 = scmp.lt.s32.totalorder %s624_s6, %s620_s16 }
  0x23   : > { %p622_p1 = pnand %p621_p0, %p776_p5 }
  0x24   : > { %p627_p7 = por %p626_p4, %p625_p3 }
  0x25   : > { %p623_p2 = pneg %p622_p1 }
  0x27   : > { %p628_p8 = pnand %p627_p7, %p623_p2 }
  0x9d   : > { %v295_v7 = vpop.f32.mrf.mxu0 }
  0x9e   : > { %v296_v8 = vadd.f32 %v569_v6, %v295_v7 }
  0xa0   : > { %298 = vst [vmem:[%s810_s30] sm:$0xff] %v296_v8  ;;  %299 = vmax.xlane.f32.xlu0 %v296_v8 }
  0xb4   : > { %312 = vperm.xlu0 %568, %v308_v9  }
 0x113   : > { %v300_v10 = vpop.xlane.xlu0 %299 }
 0x114   : > { %v301_v11 = vsub.f32 %v296_v8, %v300_v10 }
 0x116   : > { %v302_v12 = vmul.f32 1.442695, %v301_v11 }
 0x118   : > { %570 = vpow2.f32 %v302_v12 }
 0x11e   : > { %v571_v13 = vpop.eup %570 }
 0x11f   : > { %304 = vadd.xlane.f32.xlu1 %v571_v13 }
 0x126   : > { %v313_v16 = vpop.permute.xlu0 %312 }
 0x127   : > { %vm314_vm1 = vcmp.eq.s32.totalorder %v310_v15, %v313_v16 }
 0x128   : > { %v315_v17 = vsel %vm314_vm1, %v301_v11, 0.0 }
 0x129   : > { %316 = vadd.xlane.f32.xlu1 %v315_v17 }
 0x192   : > { %v305_v18 = vpop.xlane.xlu1 %304 }
 0x193   : > { %572 = vlog2.f32 %v305_v18 }
 0x199   : > { %v573_v22 = vpop.eup %572 }
 0x19a   : > { %v307_v23 = vmul.f32 0.6931472, %v573_v22 }
 0x19c   : > { %v317_v24 = vpop.xlane.xlu1 %316 }
 0x19d   : > { %v318_v25 = vsub.f32 %v307_v23, %v317_v24 }
 0x19f   : > { %v325_v26 = vsel %vm324_vm2, %v318_v25, 0.0 }
 0x1a0   : > { %v327_v27 = vsel %vm326_vm3, %v325_v26, 0.0 }
 0x1a1   : > { %328 = vadd.xlane.f32.xlu2 %v327_v27 }
 0x1a2   : > { %631 = shalt.err (!%p628_p8)
}
 0x1a3   : > { %514 = dma.vmem_to_hbm [thread:$0]  (%p776_p5), %s358_s12, 128, %s360_s13, %s340_s14  }
 0x1a4   : > { %s369_s22 = scalar_lea.hbm %s875_s5, %s817_s9  ;;  %s256_s11 = scalar_lea.vmem [#allocation6], %s496_s23 }
 0x1a5   : > { %s371_s15 = sshll.u32 %s256_s11, 4  ;;  %s373_s16 = sshll.u32 %s369_s22, 4  ;;  %s372_s15 = int_to_ptr.vmem [resolvable:$true] %s371_s15  ;;  %s374_s16 = int_to_ptr.hbm [resolvable:$true] %s373_s16 }
 0x1a6   : > { %s345_s13 = scalar_lea.sflag [#allocation7], %s802_s17  ;;  %s646_s14 = sshra.s32 %s374_s16, 4  ;;  %s647_s14 = int_to_ptr.hbm [resolvable:$true] %s646_s14 }
 0x1a7   : > { %s648_s25 = scalar_lea.hbm %s647_s14, 8  ;;  %s652_s9 = scalar_lea.hbm %s875_s5, 32 }
 0x1a8   : > { %p649_p9 = scmp.ne.s32.totalorder %s647_s14, %s648_s25  ;;  %p653_p12 = scmp.lt.s32.totalorder %s647_s14, %s875_s5 }
 0x1a9   : > { %p654_p13 = scmp.lt.s32.totalorder %s652_s9, %s648_s25 }
 0x1aa   : > { %p650_p10 = pnand %p649_p9, %p776_p5 }
 0x1ab   : > { %p655_p0 = por %p654_p13, %p653_p12 }
 0x1ac   : > { %p651_p11 = pneg %p650_p10 }
 0x1ae   : > { %p656_p1 = pnand %p655_p0, %p651_p11 }
 0x214   : > { %v329_v28 = vpop.xlane.xlu2 %328 }
 0x215   : > { %v330_v29 = vrot.slane %v329_v28, 4 }
 0x217   : > { %v331_v30 = vadd.f32 %v330_v29, %v329_v28 }
 0x219   : > { %v332_v31 = vrot.slane %v331_v30, 2 }
 0x21b   : > { %v333_v32 = vadd.f32 %v332_v31, %v331_v30 }
 0x21d   : > { %v334_v33 = vrot.slane %v333_v32, 1 }
 0x21f   : > { %v335_v34 = vadd.f32 %v334_v33, %v333_v32 }
 0x221   : > { %508 = vpush %v335_v34 }
 0x252   : > { %s509_s12 = spop %508 }
 0x253   : > { %v337_v35 = vstv %s509_s12 }
 0x254   : > { %338 = vst [vmem:[%s256_s11] sm:$0xff] %v337_v35 }
 0x255   : > { %659 = shalt.err (!%p656_p1)
}
 0x256   : > { %515 = dma.vmem_to_hbm [thread:$0]  (%p776_p5), %s372_s15, 128, %s374_s16, %s345_s13  }
 0x257 PF: > { %p531_p2 = scmp.ge.s32.totalorder %s702_s21, 2  ;;  %s385_s17 = sand.u32 1, %s690_s18  }
 0x258   : > { %s386_s8 = scalar_lea.sflag [#allocation4], %s385_s17 }
 0x259   : > { %p523_p3 = pnand %p531_p2, %p780_p6 }
 0x25b   : > { %p524_p4 = pneg %p523_p3 }
 0x25d   : > { %681 = dma.done.wait (%p524_p4), %s386_s8, 128  }
 0x25e   : > { %683 = vsyncadd (%p524_p4), %s386_s8, 4294967168  ;;  %s396_s30 = scalar_lea.sflag [#allocation7], %s385_s17 }
 0x25f   : > { %685 = dma.done.wait (%p524_p4), %s396_s30, 128  }
 0x260   : > { %687 = vsyncadd (%p524_p4), %s396_s30, 4294967168  ;;  %p20_p5 = scmp.ge.s32.totalorder %s763_s24, 6   ;;  %s878_s18 = smov %s694_s19 }
 0x261   : > { %s879_s19 = smov %s698_s20  ;;  %s880_s20 = smov %s774_s27 }
 0x262   : > { %s881_s21 = smov %s763_s24  ;;  %22 = sbr.rel (!%p20_p5) target bundleno = 6 (0x6), region = 96 }
 0x267   :  { %402 = vsyncpa [#allocation3], 1 }
 0x268   :  { %404 = vsyncpa [#allocation3 + $0x1], 1 }
 0x269   :  { %405 = vsyncpa [#allocation4], 1 }
 0x26a   :  { %407 = vsyncpa [#allocation4 + $0x1], 1 }
 0x26b   :  { %408 = vsyncpa [#allocation7], 1 }
 0x26c   :  { %410 = vsyncpa [#allocation7 + $0x1], 1 }

</bundles_post_ra>
